<compile_context>
chip_gen: v5e
topology: v5e:2x2
jax: 0.10.0
libtpu: 0.0.40
codegen_flags: <defaults>
</compile_context>

<pallas_src>
import jax
import jax.numpy as jnp
from jax.experimental import pallas as pl
from jax.experimental.pallas import tpu as pltpu

_LANE = 128
_SMALL_THRESHOLD = 256 * 1024        # elements; below this -> single-program path
_TARGET_BLOCK_BYTES = 2 * 1024 * 1024  # ~2 MiB per buffer on the gridded path


def sub_self_kernel(x_ref, o_ref):
    x = x_ref[...]
    o_ref[...] = x - x  # literal x - x (preserves NaN/Inf semantics)


def _sublane_multiple(dtype):
    """Sublane alignment: 8 for 32-bit, 16 for 16-bit, 32 for 8-bit dtypes."""
    itemsize = jnp.dtype(dtype).itemsize
    return 8 * max(1, 4 // itemsize)


def sub_self_forward(x):
    """y = x - x, same shape/dtype as x."""
    orig_shape = x.shape
    n = x.size
    if n == 0:
        return x

    dtype = x.dtype
    itemsize = jnp.dtype(dtype).itemsize
    sub = _sublane_multiple(dtype)
    cost = pl.CostEstimate(flops=n, transcendentals=0,
                           bytes_accessed=2 * n * itemsize)

    if n <= _SMALL_THRESHOLD:
        # ---- tiny path: single program, whole slab in VMEM, no grid ----
        lane_w = _LANE
        tile_elems = sub * lane_w
        pad = (-n) % tile_elems
        xf = x.reshape(-1)
        if pad:
            xf = jnp.pad(xf, (0, pad))
        x2 = xf.reshape(-1, lane_w)

        out2 = pl.pallas_call(
            sub_self_kernel,
            out_shape=jax.ShapeDtypeStruct(x2.shape, x2.dtype),
            in_specs=[pl.BlockSpec(memory_space=pltpu.MemorySpace.VMEM)],
            out_specs=pl.BlockSpec(memory_space=pltpu.MemorySpace.VMEM),
            cost_estimate=cost,
        )(x2)
        return out2.reshape(-1)[:n].reshape(orig_shape)

    # ---- large path: lane-dense gridded streaming with auto double-buffering ----
    lane_w = 1024  # wide lane-dense last dim (multiple of 128)
    # Rows per block sized to ~2 MiB, aligned to the dtype sublane multiple.
    tm = max(sub, (_TARGET_BLOCK_BYTES // (lane_w * itemsize)) // sub * sub)

    # Pad so the flat array reshapes to (m, lane_w) with m a multiple of `sub`.
    pad = (-n) % (sub * lane_w)
    xf = x.reshape(-1)
    if pad:
        xf = jnp.pad(xf, (0, pad))
    x2 = xf.reshape(-1, lane_w)
    m = x2.shape[0]

    out2 = pl.pallas_call(
        sub_self_kernel,
        out_shape=jax.ShapeDtypeStruct(x2.shape, x2.dtype),
        grid=(pl.cdiv(m, tm),),
        in_specs=[pl.BlockSpec((tm, lane_w), lambda i: (i, 0))],
        out_specs=pl.BlockSpec((tm, lane_w), lambda i: (i, 0)),
        compiler_params=pltpu.CompilerParams(
            dimension_semantics=("parallel",)),
        cost_estimate=cost,
    )(x2)
    return out2.reshape(-1)[:n].reshape(orig_shape)


def ref_forward(x):
    return x - x


if __name__ == "__main__":
    key = jax.random.PRNGKey(0)

    # SubSelf(size) ignores `size`; forward just takes x.  Small 4-D
    # activation-like input consistent with the other simple_nns modules.
    B, C, H, W = 2, 4, 16, 16
    x = jax.random.normal(key, (B, C, H, W), jnp.float32)

    out = jax.block_until_ready(sub_self_forward(x))
    ref = jax.block_until_ready(ref_forward(x))
    assert out.shape == x.shape and out.dtype == x.dtype, (out.shape, out.dtype)
    assert bool(jnp.array_equal(out, ref)), "mismatch vs reference (small path)"

    # Also exercise the ragged / padded small path once.
    x_odd = jax.random.normal(jax.random.PRNGKey(1), (3, 5, 7), jnp.float32)
    out_odd = jax.block_until_ready(sub_self_forward(x_odd))
    assert bool(jnp.array_equal(out_odd, ref_forward(x_odd))), "mismatch (ragged path)"

    # And the gridded large path (still modest: 2 MiB f32).
    x_big = jax.random.normal(jax.random.PRNGKey(2), (512, 1024), jnp.float32)
    out_big = jax.block_until_ready(sub_self_forward(x_big))
    assert bool(jnp.array_equal(out_big, ref_forward(x_big))), "mismatch (grid path)"

    print("KERNEL_OK")
</pallas_src>

<mosaic_0001>
module attributes {stable_mosaic.version = 11 : i64} {
  func.func @sub_self_kernel(%arg0: memref<16x128xf32, #tpu.memory_space<vmem>>, %arg1: memref<16x128xf32, #tpu.memory_space<vmem>>) attributes {dimension_semantics = [], scalar_prefetch = 0 : i64, scratch_operands = 0 : i64, tpu.core_type = #tpu.core_type<tc>} {
    %c0 = arith.constant 0 : index
    %c0_0 = arith.constant 0 : index
    %0 = vector.load %arg0[%c0, %c0_0] : memref<16x128xf32, #tpu.memory_space<vmem>>, vector<16x128xf32>
    %1 = arith.subf %0, %0 : vector<16x128xf32>
    %c0_1 = arith.constant 0 : index
    %c0_2 = arith.constant 0 : index
    %2 = vector.load %arg1[%c0_1, %c0_2] : memref<16x128xf32, #tpu.memory_space<vmem>>, vector<16x128xf32>
    tpu.vector_store %arg1[%c0_1, %c0_2], %1 {strides = array<i32>} : memref<16x128xf32, #tpu.memory_space<vmem>>, vector<16x128xf32>,
    return
  }
}

</mosaic_0001>

<bundles_post_ra>
// kernel: tpu_custom_call.1
= control target key start
LH: loop header
LB: loop body
LE: loop exit
PB: predicated region body
PF: predicated region fallthrough
CT: control target
= control target key end

     0   :  { %6 = vsyncpa [#allocation3], 0  ;;  %s126_s0 = inlined_call_operand.hbm [shape: f32[16,128], index: 0, kind: input, shape index: {}]   ;;  %s127_s1 = inlined_call_operand.hbm [shape: f32[16,128], index: 1, kind: output, shape index: {}]  }
   0x1   :  { %7 = vsyncpa [#allocation4], 0  ;;  %s12_s8 = sshll.u32 %s126_s0, 4  ;;  %s106_s9 = smov [#allocation2]   ;;  %s13_s8 = int_to_ptr.hbm [resolvable:$true] %s12_s8 }
   0x2   :  { %s14_s10 = sshll.u32 %s106_s9, 4  ;;  %s107_s11 = smov 128   ;;  %s15_s10 = int_to_ptr.vmem [resolvable:$true] %s14_s10 }
   0x3   :  { %s108_s12 = smov 8  }
   0x4   :  { %20 = dma.hbm_to_vmem [thread:$0]  %s13_s8, 256, %s15_s10, [#allocation3], %s107_s11, %s107_s11, %s108_s12  }
   0x5   :  { %102 = dma.done.wait [#allocation3], 256  }
   0x6   :  { %103 = vsyncadd [#allocation3], 4294967040  ;;  %s109_s13 = smov [#allocation5]   ;;  %s37_s17 = sshll.u32 %s127_s1, 4  ;;  %v25_v0 = vld [vmem:[#allocation2] sm:$0xff]  ;;  %v26_v1 = vld [vmem:[#allocation2 + $0x8] sm:$0xff]  ;;  %s38_s17 = int_to_ptr.hbm [resolvable:$true] %s37_s17 }
   0x7   :  { %s35_s14 = sshll.u32 %s109_s13, 4  ;;  %v27_v2 = vsub.f32 %v25_v0, %v25_v0  ;;  %v28_v3 = vsub.f32 %v26_v1, %v26_v1  ;;  %s36_s14 = int_to_ptr.vmem [resolvable:$true] %s35_s14 }
   0x9   :  { %29 = vst [vmem:[#allocation5] sm:$0xff] %v27_v2 }
   0xa   :  { %30 = vst [vmem:[#allocation5 + $0x8] sm:$0xff] %v28_v3 }
   0xb   :  { %43 = dma.vmem_to_hbm [thread:$0]  %s36_s14, 256, %s38_s17, [#allocation4], %s107_s11, %s107_s11, %s108_s12  }
   0xc   :  { %104 = dma.done.wait [#allocation4], 256  }
   0xd   :  { %105 = vsyncadd [#allocation4], 4294967040 }
   0xe   :  { %48 = vsyncpa [#allocation3], 1 }
   0xf   :  { %49 = vsyncpa [#allocation4], 1 }

</bundles_post_ra>
